<compile_context>
chip_gen: v5e
topology: v5e:2x2
jax: 0.10.0
libtpu: 0.0.40
codegen_flags: <defaults>
</compile_context>

<pallas_src>
import functools

import numpy as np
import jax
import jax.numpy as jnp
from jax.experimental import pallas as pl
from jax.experimental.pallas import tpu as pltpu

BIN_SIZES = (1, 2, 3, 6)
NUM_BINS = sum(b * b for b in BIN_SIZES)          # 50 pooled positions total
PB_ROWS = ((NUM_BINS + 7) // 8) * 8               # 56, sublane-aligned


def _round_up(x, m):
    return ((x + m - 1) // m) * m


# ---------------------------------------------------------------------------
# host-side helpers (index / weight-matrix construction — glue, no hot compute)
# ---------------------------------------------------------------------------

def adaptive_avg_pool_matrix(in_size, out_size):
    """P[i, h]: pooled = P @ x reproduces nn.AdaptiveAvgPool2d per spatial axis."""
    P = np.zeros((out_size, in_size), np.float32)
    for i in range(out_size):
        start = (i * in_size) // out_size
        end = -((-(i + 1) * in_size) // out_size)  # ceil
        P[i, start:end] = 1.0 / (end - start)
    return P


def bilinear_matrix(out_size, in_size):
    """W[y, i]: F.interpolate(mode='bilinear', align_corners=False) per axis."""
    Wm = np.zeros((out_size, in_size), np.float32)
    scale = in_size / out_size
    for y in range(out_size):
        src = max((y + 0.5) * scale - 0.5, 0.0)
        i0 = min(int(np.floor(src)), in_size - 1)
        i1 = min(i0 + 1, in_size - 1)
        frac = src - i0
        Wm[y, i0] += 1.0 - frac
        Wm[y, i1] += frac
    return Wm


def bn_fold(gamma, beta, mean, var, eps=1e-5):
    scale = gamma / jnp.sqrt(var + eps)
    return scale, beta - mean * scale


@functools.lru_cache(maxsize=None)
def _geometry(H, W, row_tile):
    """Flat-padded geometry: (Hp, Wp, hwp, hwp_r, halo, r_ext)."""
    Hp, Wp = H + 2, W + 2
    hwp = Hp * Wp                                  # rows of the padded-flat map
    hwp_r = _round_up(hwp, row_tile)               # rounded output rows
    halo = _round_up(Wp + 1, 8)                    # max |tap offset|, sublane-aligned
    r_ext = _round_up(hwp_r + 2 * halo, row_tile)  # rows of the extended map
    return Hp, Wp, hwp, hwp_r, halo, r_ext


@functools.lru_cache(maxsize=None)
def _pool_upsample_mats(H, W, row_tile):
    """Pool matrix (PB_ROWS, r_ext) and upsample matrix (r_ext, PB_ROWS) on the
    zero-padded flat-spatial grid used by the kernels (numpy f32, cached)."""
    Hp, Wp, hwp, hwp_r, halo, r_ext = _geometry(H, W, row_tile)
    hh, ww = np.meshgrid(np.arange(H), np.arange(W), indexing="ij")
    ext_idx = (halo + (hh + 1) * Wp + (ww + 1)).reshape(-1)    # ext row of pixel (h,w)
    P = np.zeros((PB_ROWS, r_ext), np.float32)
    U = np.zeros((r_ext, PB_ROWS), np.float32)
    row0 = 0
    for b in BIN_SIZES:
        Pk = np.kron(adaptive_avg_pool_matrix(H, b), adaptive_avg_pool_matrix(W, b))
        Uk = np.kron(bilinear_matrix(H, b), bilinear_matrix(W, b))
        P[row0:row0 + b * b, ext_idx] = Pk
        U[ext_idx, row0:row0 + b * b] = Uk
        row0 += b * b
    return P, U


@functools.lru_cache(maxsize=None)
def _branch_mask(cb):
    """(PB_ROWS, 4*cb): selects, per pooled row, the output-column chunk of its branch."""
    mask = np.zeros((PB_ROWS, 4 * cb), np.float32)
    row0 = 0
    for i, b in enumerate(BIN_SIZES):
        mask[row0:row0 + b * b, i * cb:(i + 1) * cb] = 1.0
        row0 += b * b
    return mask


# ---------------------------------------------------------------------------
# VMEM budgeting (review: never blanket-request 64 MiB — v7x only has 64 MiB)
# ---------------------------------------------------------------------------

def _buf_bytes(shape, dtype):
    """Rough per-buffer VMEM footprint including (8,128) layout padding."""
    shape = tuple(int(s) for s in shape)
    if len(shape) < 2:
        shape = (1,) * (2 - len(shape)) + shape
    lead = int(np.prod(shape[:-2], dtype=np.int64)) if len(shape) > 2 else 1
    return (lead * _round_up(shape[-2], 8) * _round_up(shape[-1], 128)
            * np.dtype(dtype).itemsize)


def _compiler_params(semantics, vmem_bytes_needed):
    try:
        cap = int(pltpu.get_tpu_info().vmem_capacity_bytes)
    except Exception:
        cap = 64 * 1024 * 1024                     # conservative (v7x-sized) fallback
    limit = int(min(cap - 4 * 1024 * 1024,
                    max(32 * 1024 * 1024, vmem_bytes_needed)))
    return pltpu.CompilerParams(dimension_semantics=semantics,
                                vmem_limit_bytes=limit)


# ---------------------------------------------------------------------------
# Kernel A: fused pyramid pooling + per-branch 1x1 conv + BN + ReLU
# (HBM-bound streaming pass over x; pooled accumulator kept in f32)
# ---------------------------------------------------------------------------

def _pool_branch_kernel(x_ref, p_ref, wbr_ref, sbr_ref, bbr_ref, mask_ref,
                        y_ref, pooled_acc):
    t = pl.program_id(1)

    @pl.when(t == 0)
    def _init():
        pooled_acc[...] = jnp.zeros_like(pooled_acc)

    # P is f32, x is bf16 -> promoted f32 matmul; accumulation stays f32.
    pooled_acc[...] += jnp.dot(p_ref[...], x_ref[0],
                               preferred_element_type=jnp.float32)

    @pl.when(t == pl.num_programs(1) - 1)
    def _finalize():
        y = jnp.dot(pooled_acc[...].astype(jnp.bfloat16), wbr_ref[...],
                    preferred_element_type=jnp.float32)
        y = jnp.maximum(y * sbr_ref[...] + bbr_ref[...], 0.0) * mask_ref[...]
        y_ref[0] = y.astype(y_ref.dtype)


def pool_branches(x_pfe, p_mat, wbr, sbr, bbr, mask, *, row_tile):
    n, r_ext, cin = x_pfe.shape
    c4 = wbr.shape[1]
    n_tiles = r_ext // row_tile
    est = (2 * (_buf_bytes((row_tile, cin), jnp.bfloat16)
                + _buf_bytes((PB_ROWS, row_tile), jnp.float32)
                + _buf_bytes((cin, c4), jnp.bfloat16)
                + 2 * _buf_bytes((1, c4), jnp.float32)
                + _buf_bytes((PB_ROWS, c4), jnp.float32)       # mask
                + _buf_bytes((PB_ROWS, c4), jnp.float32))      # out block
           + _buf_bytes((PB_ROWS, cin), jnp.float32)           # pooled accumulator
           + (4 << 20))
    return pl.pallas_call(
        _pool_branch_kernel,
        out_shape=jax.ShapeDtypeStruct((n, PB_ROWS, c4), jnp.float32),
        grid=(n, n_tiles),
        in_specs=[
            pl.BlockSpec((1, row_tile, cin), lambda i, t: (i, t, 0)),
            pl.BlockSpec((PB_ROWS, row_tile), lambda i, t: (0, t)),
            pl.BlockSpec((cin, c4), lambda i, t: (0, 0)),
            pl.BlockSpec((1, c4), lambda i, t: (0, 0)),
            pl.BlockSpec((1, c4), lambda i, t: (0, 0)),
            pl.BlockSpec((PB_ROWS, c4), lambda i, t: (0, 0)),
        ],
        out_specs=pl.BlockSpec((1, PB_ROWS, c4), lambda i, t: (i, 0, 0)),
        scratch_shapes=[pltpu.VMEM((PB_ROWS, cin), jnp.float32)],
        compiler_params=_compiler_params(("parallel", "arbitrary"), est),
    )(x_pfe, p_mat, wbr, sbr, bbr, mask)


# ---------------------------------------------------------------------------
# Kernel C (fused): bilinear upsample of branches (in VMEM) + 3x3 conv
# (9 row-shifted matmuls, x part from a manually double-buffered halo DMA)
# + BN + ReLU + final 1x1 conv, bf16 lane-dense output.  w3 stays resident.
# ---------------------------------------------------------------------------

def _make_conv_head_kernel(row_tile, halo, wp):
    rows = row_tile + 2 * halo

    def kernel(x_hbm, u_ref, ysel_ref, w3x_ref, w3b_ref, s5_ref, b5_ref,
               w1_ref, b1_ref, o_ref, xbuf, upbuf, acc, sem):
        n = pl.program_id(0)
        t = pl.program_id(1)
        n_t = pl.num_programs(1)
        slot = t % 2

        def start_fetch(tt, sl):
            pltpu.make_async_copy(
                x_hbm.at[n, pl.ds(tt * row_tile, rows), :],
                xbuf.at[sl], sem.at[sl]).start()

        # Prime only once per batch element (t == 0); subsequent windows were
        # prefetched by the previous row tile -> only one exposed DMA per n.
        @pl.when(t == 0)
        def _prime():
            start_fetch(t, slot)

        @pl.when(t + 1 < n_t)
        def _prefetch():
            start_fetch(t + 1, (t + 1) % 2)

        # Wait with a descriptor that exactly matches the copy started for (n, t).
        pltpu.make_async_copy(
            x_hbm.at[n, pl.ds(t * row_tile, rows), :],
            xbuf.at[slot], sem.at[slot]).wait()

        # Rebuild the branch-feature slab for this halo window in VMEM:
        # up = U[window] @ ysel  (K = 56, tiny; U and ysel kept in f32).
        base = pl.multiple_of(t * row_tile, row_tile)
        u_win = u_ref[pl.ds(base, rows), :]
        upbuf[...] = jnp.dot(u_win, ysel_ref[0],
                             preferred_element_type=jnp.float32).astype(upbuf.dtype)

        # 3x3 conv over the (virtual) concat map = 9 taps x (x-part + branch-part),
        # accumulated per tap directly into the f32 VMEM accumulator.
        xw = xbuf.at[slot]
        first = True
        for kh in range(3):
            for kw in range(3):
                off = halo + (kh - 1) * wp + (kw - 1)
                contrib = (
                    jnp.dot(xw[pl.ds(off, row_tile), :], w3x_ref[kh, kw],
                            preferred_element_type=jnp.float32)
                    + jnp.dot(upbuf[pl.ds(off, row_tile), :], w3b_ref[kh, kw],
                              preferred_element_type=jnp.float32))
                if first:
                    acc[...] = contrib
                    first = False
                else:
                    acc[...] += contrib

        y = jnp.maximum(acc[...] * s5_ref[...] + b5_ref[...], 0.0)
        # Dropout(0.1) is identity in eval mode.
        out = jnp.dot(y.astype(jnp.bfloat16), w1_ref[...],
                      preferred_element_type=jnp.float32) + b1_ref[...]
        o_ref[0] = out.astype(o_ref.dtype)

    return kernel


def conv3x3_bn_relu_1x1(x_pfe, u_mat, ysel, w3x, w3b, s5, b5, w1p, b1p, *,
                        row_tile, halo, wp, hwp_r):
    n, r_ext, cin = x_pfe.shape
    c4 = ysel.shape[2]
    cm = w3x.shape[3]
    cout_pad = w1p.shape[1]
    n_row_tiles = hwp_r // row_tile
    rows = row_tile + 2 * halo
    kernel = _make_conv_head_kernel(row_tile, halo, wp)
    est = (2 * (_buf_bytes((r_ext, PB_ROWS), jnp.float32)       # resident U
                + _buf_bytes((PB_ROWS, c4), jnp.float32)         # ysel block
                + _buf_bytes((9, cin, cm), jnp.bfloat16)         # resident w3 (x part)
                + _buf_bytes((9, c4, cm), jnp.bfloat16)          # resident w3 (branch)
                + 2 * _buf_bytes((1, cm), jnp.float32)           # s5, b5
                + _buf_bytes((cm, cout_pad), jnp.bfloat16)       # w1
                + _buf_bytes((1, cout_pad), jnp.float32)         # b1
                + _buf_bytes((row_tile, cout_pad), jnp.bfloat16))  # out block
           + 2 * _buf_bytes((rows, cin), jnp.bfloat16)           # halo double buffer
           + _buf_bytes((rows, c4), jnp.bfloat16)                # upsampled-branch slab
           + _buf_bytes((row_tile, cm), jnp.float32)             # conv accumulator
           + (4 << 20))
    return pl.pallas_call(
        kernel,
        out_shape=jax.ShapeDtypeStruct((n, hwp_r, cout_pad), jnp.bfloat16),
        grid=(n, n_row_tiles),
        in_specs=[
            pl.BlockSpec(memory_space=pl.ANY),                        # x: manual halo DMA
            pl.BlockSpec((r_ext, PB_ROWS), lambda i, t: (0, 0)),      # U, resident
            pl.BlockSpec((1, PB_ROWS, c4), lambda i, t: (i, 0, 0)),   # pooled branch feats
            pl.BlockSpec((3, 3, cin, cm), lambda i, t: (0, 0, 0, 0)),  # w3 (x), resident
            pl.BlockSpec((3, 3, c4, cm), lambda i, t: (0, 0, 0, 0)),   # w3 (branch), resident
            pl.BlockSpec((1, cm), lambda i, t: (0, 0)),
            pl.BlockSpec((1, cm), lambda i, t: (0, 0)),
            pl.BlockSpec((cm, cout_pad), lambda i, t: (0, 0)),
            pl.BlockSpec((1, cout_pad), lambda i, t: (0, 0)),
        ],
        out_specs=pl.BlockSpec((1, row_tile, cout_pad), lambda i, t: (i, t, 0)),
        scratch_shapes=[
            pltpu.VMEM((2, rows, cin), jnp.bfloat16),    # double-buffered halo tiles
            pltpu.VMEM((rows, c4), jnp.bfloat16),        # upsampled branch window
            pltpu.VMEM((row_tile, cm), jnp.float32),     # conv accumulator
            pltpu.SemaphoreType.DMA((2,)),
        ],
        compiler_params=_compiler_params(("parallel", "arbitrary"), est),
    )(x_pfe, u_mat, ysel, w3x, w3b, s5, b5, w1p, b1p)


# ---------------------------------------------------------------------------
# parameters & forward
# ---------------------------------------------------------------------------

def init_params(in_channels, out_channels, key):
    cb = in_channels // 4            # pyramid branch channels
    cc = in_channels + 4 * cb        # channels after concat
    cm = in_channels // 4            # inter_channels
    ks = jax.random.split(key, 32)
    counter = iter(range(32))

    def nrm(shape, s=0.1):
        return s * jax.random.normal(ks[next(counter)], shape, jnp.float32)

    params = {"branches": []}
    for _ in BIN_SIZES:
        w = nrm((in_channels, cb))                         # 1x1 conv (Cin, Cb)
        gamma = 1.0 + nrm((cb,))
        beta = nrm((cb,))
        mean = nrm((cb,))
        var = 1.0 + 0.1 * jax.nn.softplus(jax.random.normal(ks[next(counter)], (cb,)))
        s, b = bn_fold(gamma, beta, mean, var)
        params["branches"].append({"w": w, "scale": s, "bias": b})

    params["w3"] = nrm((3, 3, cc, cm))                     # HWIO
    gamma = 1.0 + nrm((cm,))
    beta = nrm((cm,))
    mean = nrm((cm,))
    var = 1.0 + 0.1 * jax.nn.softplus(jax.random.normal(ks[next(counter)], (cm,)))
    params["scale5"], params["bias5"] = bn_fold(gamma, beta, mean, var)
    params["w1"] = nrm((cm, out_channels))                 # final 1x1 conv
    params["b1"] = nrm((out_channels,))
    return params


def psp_head_forward(x_nchw, params, *, row_tile=512):
    # row_tile: rows of the flat-padded spatial map processed per grid step in both
    # kernels.  Large tiles amortize weight / halo traffic (review); 512 default,
    # must be a multiple of 128 (lane-dense P-matrix tiles).  For production sizes
    # in_channels should be a multiple of 128 for lane-dense halo DMAs.
    N, C, H, W = x_nchw.shape
    cb = C // 4
    c4 = 4 * cb
    cm = params["w3"].shape[3]
    cout = params["w1"].shape[1]
    cout_pad = _round_up(cout, 128)
    assert row_tile % 128 == 0

    Hp, Wp, hwp, hwp_r, halo, r_ext = _geometry(H, W, row_tile)

    # --- host-side layout glue (one pad/reshape of x; matrices are lru-cached) ---
    x_nhwc = jnp.transpose(x_nchw, (0, 2, 3, 1))
    x_pf = jnp.pad(x_nhwc, ((0, 0), (1, 1), (1, 1), (0, 0))).reshape(N, hwp, C)
    x_pfe = jnp.pad(x_pf, ((0, 0), (halo, r_ext - hwp - halo), (0, 0))
                    ).astype(jnp.bfloat16)

    P_np, U_np = _pool_upsample_mats(H, W, row_tile)
    p_mat = jnp.asarray(P_np, jnp.float32)       # keep pooling weights in f32 (review)
    u_mat = jnp.asarray(U_np, jnp.float32)       # keep bilinear weights in f32 (review)
    mask = jnp.asarray(_branch_mask(cb), jnp.float32)

    wbr = jnp.concatenate([bp["w"] for bp in params["branches"]], axis=1
                          ).astype(jnp.bfloat16)                          # (C, 4cb)
    sbr = jnp.concatenate([bp["scale"] for bp in params["branches"]]).reshape(1, c4)
    bbr = jnp.concatenate([bp["bias"] for bp in params["branches"]]).reshape(1, c4)

    w3 = params["w3"].astype(jnp.bfloat16)                                # (3,3,cc,cm)
    w3x = w3[:, :, :C, :]                                                 # x channels
    w3b = w3[:, :, C:, :]                                                 # branch channels
    s5 = params["scale5"].reshape(1, cm)
    b5 = params["bias5"].reshape(1, cm)
    w1p = jnp.pad(params["w1"], ((0, 0), (0, cout_pad - cout))).astype(jnp.bfloat16)
    b1p = jnp.pad(params["b1"], (0, cout_pad - cout)).reshape(1, cout_pad)

    # --- Pallas kernels ---
    ysel = pool_branches(x_pfe, p_mat, wbr, sbr, bbr, mask, row_tile=row_tile)
    out_full = conv3x3_bn_relu_1x1(x_pfe, u_mat, ysel, w3x, w3b, s5, b5, w1p, b1p,
                                   row_tile=row_tile, halo=halo, wp=Wp, hwp_r=hwp_r)

    out = (out_full[:, :hwp, :cout].astype(jnp.float32)
           .reshape(N, Hp, Wp, cout)[:, 1:H + 1, 1:W + 1, :])
    return jnp.transpose(out, (0, 3, 1, 2))                # back to NCHW


# ---------------------------------------------------------------------------
# pure-JAX reference (for correctness check of the Pallas kernels)
# ---------------------------------------------------------------------------

def psp_head_reference(x_nchw, params):
    N, C, H, W = x_nchw.shape
    x = jnp.transpose(x_nchw, (0, 2, 3, 1))
    feats = [x]
    for b, bp in zip(BIN_SIZES, params["branches"]):
        Py = jnp.asarray(adaptive_avg_pool_matrix(H, b))
        Px = jnp.asarray(adaptive_avg_pool_matrix(W, b))
        pooled = jnp.einsum('ih,jw,nhwc->nijc', Py, Px, x, precision='highest')
        y = jnp.einsum('nijc,cd->nijd', pooled, bp["w"], precision='highest')
        y = jnp.maximum(y * bp["scale"] + bp["bias"], 0.0)
        Uy = jnp.asarray(bilinear_matrix(H, b))
        Ux = jnp.asarray(bilinear_matrix(W, b))
        feats.append(jnp.einsum('yi,xj,nijd->nyxd', Uy, Ux, y, precision='highest'))
    cat = jnp.concatenate(feats, axis=-1)
    z = jax.lax.conv_general_dilated(cat, params["w3"], (1, 1), 'SAME',
                                     dimension_numbers=('NHWC', 'HWIO', 'NHWC'),
                                     precision=jax.lax.Precision.HIGHEST)
    z = jnp.maximum(z * params["scale5"] + params["bias5"], 0.0)
    out = jnp.einsum('nhwc,co->nhwo', z, params["w1"], precision='highest') + params["b1"]
    return jnp.transpose(out, (0, 3, 1, 2))


if __name__ == "__main__":
    N, C, H, W = 2, 128, 16, 16         # in_channels=128 -> inter=32, concat=256
    OUT_CH = 19
    key = jax.random.PRNGKey(0)
    kx, kp = jax.random.split(key)
    x = jax.random.normal(kx, (N, C, H, W), jnp.float32)
    params = init_params(C, OUT_CH, kp)

    # row_tile=128 at this toy size gives 3 output row tiles (and 4 streaming
    # tiles), exercising the pooled accumulator, the per-batch halo-DMA priming
    # and the row-tile prefetch chain.  Production sizes use the default 512.
    out = jax.block_until_ready(psp_head_forward(x, params, row_tile=128))
    assert out.shape == (N, OUT_CH, H, W), out.shape
    assert bool(jnp.all(jnp.isfinite(out)))

    ref = jax.block_until_ready(psp_head_reference(x, params))
    max_err = float(jnp.max(jnp.abs(out - ref)))
    tol = 3e-2 * (1.0 + float(jnp.max(jnp.abs(ref))))      # bf16 matmuls / bf16 output
    assert max_err < tol, (max_err, tol)

    print("KERNEL_OK")
</pallas_src>

<mosaic_0001>
module attributes {stable_mosaic.version = 11 : i64} {
  func.func @_pool_branch_kernel(%arg0: i32, %arg1: i32, %arg2: memref<1x128x128xbf16, #tpu.memory_space<vmem>>, %arg3: memref<56x128xf32, #tpu.memory_space<vmem>>, %arg4: memref<128x128xbf16, #tpu.memory_space<vmem>>, %arg5: memref<1x128xf32, #tpu.memory_space<vmem>>, %arg6: memref<1x128xf32, #tpu.memory_space<vmem>>, %arg7: memref<56x128xf32, #tpu.memory_space<vmem>>, %arg8: memref<1x56x128xf32, #tpu.memory_space<vmem>>, %arg9: memref<56x128xf32, #tpu.memory_space<vmem>>) attributes {dimension_semantics = [#tpu.dimension_semantics<parallel>, #tpu.dimension_semantics<arbitrary>], iteration_bounds = array<i64: 2, 4>, scalar_prefetch = 0 : i64, scratch_operands = 1 : i64, tpu.core_type = #tpu.core_type<tc>, window_params = [{transform_indices = @transform_0, window_bounds = array<i64: 1, 128, 128>}, {transform_indices = @transform_1, window_bounds = array<i64: 56, 128>}, {pipeline_mode = #tpu.pipeline_mode<synchronous>, transform_indices = @transform_2, window_bounds = array<i64: 128, 128>}, {pipeline_mode = #tpu.pipeline_mode<synchronous>, transform_indices = @transform_3, window_bounds = array<i64: 1, 128>}, {pipeline_mode = #tpu.pipeline_mode<synchronous>, transform_indices = @transform_4, window_bounds = array<i64: 1, 128>}, {pipeline_mode = #tpu.pipeline_mode<synchronous>, transform_indices = @transform_5, window_bounds = array<i64: 56, 128>}, {transform_indices = @transform_6, window_bounds = array<i64: 1, 56, 128>}]} {
    %c0_i32 = arith.constant 0 : i32
    %0 = arith.cmpi eq, %arg1, %c0_i32 : i32
    %1 = arith.extui %0 : i1 to i32
    %c0_i32_0 = arith.constant 0 : i32
    %2 = arith.cmpi ne, %1, %c0_i32_0 : i32
    scf.if %2 {
      %cst_10 = arith.constant 0.000000e+00 : f32
      %13 = vector.broadcast %cst_10 : f32 to vector<56x128xf32>
      %c0_11 = arith.constant 0 : index
      %c0_12 = arith.constant 0 : index
      %14 = vector.load %arg9[%c0_11, %c0_12] : memref<56x128xf32, #tpu.memory_space<vmem>>, vector<56x128xf32>
      tpu.vector_store %arg9[%c0_11, %c0_12], %13 {strides = array<i32>} : memref<56x128xf32, #tpu.memory_space<vmem>>, vector<56x128xf32>,
    } else {
    }
    %c0 = arith.constant 0 : index
    %c0_1 = arith.constant 0 : index
    %3 = vector.load %arg9[%c0, %c0_1] : memref<56x128xf32, #tpu.memory_space<vmem>>, vector<56x128xf32>
    %c0_2 = arith.constant 0 : index
    %c0_3 = arith.constant 0 : index
    %4 = vector.load %arg3[%c0_2, %c0_3] : memref<56x128xf32, #tpu.memory_space<vmem>>, vector<56x128xf32>
    %c0_4 = arith.constant 0 : index
    %c0_5 = arith.constant 0 : index
    %c0_6 = arith.constant 0 : index
    %5 = vector.load %arg2[%c0_4, %c0_5, %c0_6] : memref<1x128x128xbf16, #tpu.memory_space<vmem>>, vector<1x128x128xbf16>
    %6 = vector.shape_cast %5 : vector<1x128x128xbf16> to vector<128x128xbf16>
    %cst = arith.constant dense<0.000000e+00> : vector<56x128xf32>
    %7 = tpu.matmul %4, %6, %cst {dimension_numbers = #tpu.dot_dimension_numbers<[1], [0], [0], [1], [0, 0, 1, 1], [], []>} : vector<56x128xf32>, vector<128x128xbf16>, vector<56x128xf32> -> vector<56x128xf32>
    %8 = arith.addf %3, %7 : vector<56x128xf32>
    %c0_7 = arith.constant 0 : index
    %c0_8 = arith.constant 0 : index
    %9 = vector.load %arg9[%c0_7, %c0_8] : memref<56x128xf32, #tpu.memory_space<vmem>>, vector<56x128xf32>
    tpu.vector_store %arg9[%c0_7, %c0_8], %8 {strides = array<i32>} : memref<56x128xf32, #tpu.memory_space<vmem>>, vector<56x128xf32>,
    %c3_i32 = arith.constant 3 : i32
    %10 = arith.cmpi eq, %arg1, %c3_i32 : i32
    %11 = arith.extui %10 : i1 to i32
    %c0_i32_9 = arith.constant 0 : i32
    %12 = arith.cmpi ne, %11, %c0_i32_9 : i32
    scf.if %12 {
      %c0_10 = arith.constant 0 : index
      %c0_11 = arith.constant 0 : index
      %13 = vector.load %arg9[%c0_10, %c0_11] : memref<56x128xf32, #tpu.memory_space<vmem>>, vector<56x128xf32>
      %14 = arith.truncf %13 : vector<56x128xf32> to vector<56x128xbf16>
      %c0_12 = arith.constant 0 : index
      %c0_13 = arith.constant 0 : index
      %15 = vector.load %arg4[%c0_12, %c0_13] : memref<128x128xbf16, #tpu.memory_space<vmem>>, vector<128x128xbf16>
      %cst_14 = arith.constant dense<0.000000e+00> : vector<56x128xf32>
      %16 = tpu.matmul %14, %15, %cst_14 {dimension_numbers = #tpu.dot_dimension_numbers<[1], [0], [0], [1], [0, 0, 1, 1], [], []>} : vector<56x128xbf16>, vector<128x128xbf16>, vector<56x128xf32> -> vector<56x128xf32>
      %c0_15 = arith.constant 0 : index
      %c0_16 = arith.constant 0 : index
      %17 = vector.load %arg5[%c0_15, %c0_16] : memref<1x128xf32, #tpu.memory_space<vmem>>, vector<1x128xf32>
      %18 = vector.broadcast %17 : vector<1x128xf32> to vector<56x128xf32>
      %19 = arith.mulf %16, %18 : vector<56x128xf32>
      %c0_17 = arith.constant 0 : index
      %c0_18 = arith.constant 0 : index
      %20 = vector.load %arg6[%c0_17, %c0_18] : memref<1x128xf32, #tpu.memory_space<vmem>>, vector<1x128xf32>
      %21 = vector.broadcast %20 : vector<1x128xf32> to vector<56x128xf32>
      %22 = arith.addf %19, %21 : vector<56x128xf32>
      %cst_19 = arith.constant 0.000000e+00 : f32
      %23 = vector.broadcast %cst_19 : f32 to vector<56x128xf32>
      %24 = arith.maximumf %22, %23 : vector<56x128xf32>
      %c0_20 = arith.constant 0 : index
      %c0_21 = arith.constant 0 : index
      %25 = vector.load %arg7[%c0_20, %c0_21] : memref<56x128xf32, #tpu.memory_space<vmem>>, vector<56x128xf32>
      %26 = arith.mulf %24, %25 : vector<56x128xf32>
      %c0_22 = arith.constant 0 : index
      %c0_23 = arith.constant 0 : index
      %c0_24 = arith.constant 0 : index
      %27 = vector.load %arg8[%c0_22, %c0_23, %c0_24] : memref<1x56x128xf32, #tpu.memory_space<vmem>>, vector<1x56x128xf32>
      %28 = vector.shape_cast %27 : vector<1x56x128xf32> to vector<56x128xf32>
      %29 = vector.shape_cast %26 : vector<56x128xf32> to vector<1x56x128xf32>
      tpu.vector_store %arg8[%c0_22, %c0_23, %c0_24], %29 {strides = array<i32>} : memref<1x56x128xf32, #tpu.memory_space<vmem>>, vector<1x56x128xf32>,
    } else {
    }
    return
  }
  func.func @transform_0(%arg0: i32, %arg1: i32) -> (i32, i32, i32) {
    %c0_i32 = arith.constant 0 : i32
    %c0_i32_0 = arith.constant 0 : i32
    return %arg0, %arg1, %c0_i32 : i32, i32, i32
  }
  func.func @transform_1(%arg0: i32, %arg1: i32) -> (i32, i32) {
    %c0_i32 = arith.constant 0 : i32
    %c0_i32_0 = arith.constant 0 : i32
    return %c0_i32, %arg1 : i32, i32
  }
  func.func @transform_2(%arg0: i32, %arg1: i32) -> (i32, i32) {
    %c0_i32 = arith.constant 0 : i32
    %c0_i32_0 = arith.constant 0 : i32
    %c0_i32_1 = arith.constant 0 : i32
    return %c0_i32, %c0_i32_0 : i32, i32
  }
  func.func @transform_3(%arg0: i32, %arg1: i32) -> (i32, i32) {
    %c0_i32 = arith.constant 0 : i32
    %c0_i32_0 = arith.constant 0 : i32
    %c0_i32_1 = arith.constant 0 : i32
    return %c0_i32, %c0_i32_0 : i32, i32
  }
  func.func @transform_4(%arg0: i32, %arg1: i32) -> (i32, i32) {
    %c0_i32 = arith.constant 0 : i32
    %c0_i32_0 = arith.constant 0 : i32
    %c0_i32_1 = arith.constant 0 : i32
    return %c0_i32, %c0_i32_0 : i32, i32
  }
  func.func @transform_5(%arg0: i32, %arg1: i32) -> (i32, i32) {
    %c0_i32 = arith.constant 0 : i32
    %c0_i32_0 = arith.constant 0 : i32
    %c0_i32_1 = arith.constant 0 : i32
    return %c0_i32, %c0_i32_0 : i32, i32
  }
  func.func @transform_6(%arg0: i32, %arg1: i32) -> (i32, i32, i32) {
    %c0_i32 = arith.constant 0 : i32
    %c0_i32_0 = arith.constant 0 : i32
    %c0_i32_1 = arith.constant 0 : i32
    return %arg0, %c0_i32, %c0_i32_0 : i32, i32, i32
  }
}

</mosaic_0001>

<bundles_post_ra>
// kernel: tpu_custom_call.1
= control target key start
LH: loop header
LB: loop body
LE: loop exit
PB: predicated region body
PF: predicated region fallthrough
CT: control target
= control target key end

     0   :  { %s1755_s0 = inlined_call_operand.hbm [shape: bf16[2,512,128], index: 0, kind: input, shape index: {}]   ;;  %s1756_s1 = inlined_call_operand.hbm [shape: f32[56,512], index: 1, kind: input, shape index: {}]   ;;  %s1757_s2 = inlined_call_operand.hbm [shape: bf16[128,128], index: 2, kind: input, shape index: {}]   ;;  %s1758_s3 = inlined_call_operand.vmem [shape: f32[1,128], index: 3, kind: input, shape index: {}]   ;;  %s1759_s4 = inlined_call_operand.vmem [shape: f32[1,128], index: 4, kind: input, shape index: {}]   ;;  %s1760_s5 = inlined_call_operand.hbm [shape: f32[56,128], index: 5, kind: input, shape index: {}]   ;;  %s1761_s6 = inlined_call_operand.hbm [shape: f32[2,56,128], index: 6, kind: output, shape index: {}]  }
   0x1   :  { %1776 = sst [smem:[#allocation28_spill]] %s1757_s2 }
   0x2   :  { %1777 = sst [smem:[#allocation29_spill]] %s1759_s4 }
   0x3   :  { %1778 = sst [smem:[#allocation30_spill]] %s1760_s5 }
   0x4   :  { %1779 = sst [smem:[#allocation31_spill]] %s1761_s6 }
   0x5   :  { %11 = vsyncpa [#allocation4], 0 }
   0x6   :  { %13 = vsyncpa [#allocation4 + $0x1], 0 }
   0x7   :  { %14 = vsyncpa [#allocation7], 0 }
   0x8   :  { %16 = vsyncpa [#allocation7 + $0x1], 0 }
   0x9   :  { %17 = vsyncpa [#allocation10], 0 }
   0xa   :  { %18 = vsyncpa [#allocation5], 0 }
   0xb   :  { %20 = vsyncpa [#allocation5 + $0x1], 0  ;;  %s1437_s21 = smov 0   ;;  %s1439_s22 = smov 0  }
   0xc   :  { %s1441_s23 = smov 0   ;;  %s1443_s24 = smov 0  }
   0xd   :  { %s1445_s25 = smov 0   ;;  %s1447_s26 = smov 0  }
   0xe   :  { %s1449_s27 = smov 0   ;;  %s1451_s28 = smov 0  }
   0xf   :  { %s1453_s29 = smov 0   ;;  %s1455_s30 = smov 0  }
  0x10   :  { %s1457_s7 = smov 0   ;;  %s1459_s8 = smov 0  }
  0x11   :  { %s1461_s9 = smov 0   ;;  %s1463_s10 = smov 0  }
  0x12 LB: > { %1780 = sst [smem:[#allocation17_spill]] %s1338_s21  ;;  %s1506_s11 = sadd.s32 4294967295, %s1390_s10   ;;  %s1390_s10 = sphi %s1463_s10, %s26_s10   ;;  %s1386_s9 = sphi %s1461_s9, %s1827_s9   ;;  %s1382_s8 = sphi %s1459_s8, %s1826_s8   ;;  %s1378_s7 = sphi %s1457_s7, %s1814_s7   ;;  %s1374_s30 = sphi %s1455_s30, %s1825_s30   ;;  %s1370_s29 = sphi %s1453_s29, %s1813_s29   ;;  %s1366_s28 = sphi %s1451_s28, %s1824_s28   ;;  %s1362_s27 = sphi %s1449_s27, %s1823_s27   ;;  %s1358_s26 = sphi %s1447_s26, %s1822_s26   ;;  %s1354_s25 = sphi %s1445_s25, %s1821_s25   ;;  %s1350_s24 = sphi %s1443_s24, %s1820_s24   ;;  %s1346_s23 = sphi %s1441_s23, %s1811_s23   ;;  %s1342_s22 = sphi %s1439_s22, %s1819_s22   ;;  %s1338_s21 = sphi %s1437_s21, %s1818_s21  }
  0x13   : > { %1781 = sst [smem:[#allocation18_spill]] %s1346_s23  ;;  %s799_s12 = sadd.s32 4294967294, %s1390_s10  }
  0x14   : > { %1782 = sst [smem:[#allocation19_spill]] %s1370_s29  ;;  %p61_p0 = scmp.eq.s32.totalorder %s1506_s11, 0 }
  0x15   : > { %1783 = sst [smem:[#allocation20_spill]] %s1378_s7  ;;  %p86_p1 = scmp.ne.s32.totalorder %s1354_s25, %s1350_s24 }
  0x16   : > { %1784 = sst [smem:[#allocation21_spill]] %s1386_s9  ;;  %p193_p2 = scmp.ne.s32.totalorder %s1346_s23, %s1342_s22 }
  0x17   : > { %p194_p3 = scmp.eq.s32.totalorder %s1506_s11, 7  ;;  %p1516_p4 = por %p86_p1, %p61_p0 }
  0x18   : > { %p199_p5 = scmp.ne.s32.totalorder %s1342_s22, %s1338_s21  ;;  %p200_p7 = scmp.eq.s32.totalorder %s799_s12, 7 }
  0x19   : > { %p1522_p6 = por %p194_p3, %p193_p2  ;;  %p800_p8 = scmp.ge.s32.totalorder %s1390_s10, 1 }
  0x1a   : > { %p207_p9 = scmp.lt.s32.totalorder %s1390_s10, 9  ;;  %p1528_p10 = por %p200_p7, %p199_p5 }
  0x1b   : > { %s1786_s14 = scalar_select %p1522_p6, 1, 0 }
  0x1c   : > { %s1788_s15 = scalar_select %p1528_p10, 1, 0 }
  0x1d   : > { %1787 = sst [smem:[#allocation22_spill]] %s1786_s14  ;;  %p1532_p11 = pnand %p800_p8, %p207_p9 }
  0x1e   : > { %1789 = sst [smem:[#allocation23_spill]] %s1788_s15  ;;  %s1392_s20 = smov [#allocation8]  }
  0x1f   : > { %s1791_s2 = sld [smem:[#allocation28_spill]]  ;;  %p964_p12 = pneg %p1532_p11 }
  0x20   : > { %s220_s24 = sshll.u32 %s1392_s20, 4  ;;  %s1792_s5 = sld [smem:[#allocation30_spill]]  ;;  %s221_s24 = int_to_ptr.vmem [resolvable:$true] %s220_s24 }
  0x21   : > { %p965_p13 = pnand %p964_p12, %p61_p0  ;;  %s1767_s17 = smov 64  }
  0x22   : > { %s1768_s18 = smov 4   ;;  %s1395_s20 = smov [#allocation9]  }
  0x23   : > { %s1765_s15 = smov 128   ;;  %s1766_s12 = smov 8  }
  0x24   : > { %s38_s6 = sadd.s32 1, %s1386_s9  ;;  %p54_p2 = scmp.ne.s32.totalorder %s1370_s29, %s1366_s28 }
  0x25   : > { %s218_s19 = sshll.u32 %s1791_s2, 4  ;;  %s240_s2 = sshll.u32 %s1395_s20, 4  ;;  %s219_s19 = int_to_ptr.hbm [resolvable:$true] %s218_s19  ;;  %s241_s2 = int_to_ptr.vmem [resolvable:$true] %s240_s2 }
  0x26   : > { %s238_s21 = sshll.u32 %s1792_s5, 4  ;;  %s35_s5 = sadd.s32 1, %s1382_s8  ;;  %s239_s21 = int_to_ptr.hbm [resolvable:$true] %s238_s21 }
  0x27   : > { %967 = dma.hbm_to_vmem [thread:$0]  (!%p965_p13), %s219_s19, 1024, %s221_s24, [#allocation7], %s1767_s17, %s1767_s17, %s1768_s18  }
  0x28   : > { %970 = dma.hbm_to_vmem [thread:$0]  (!%p965_p13), %s239_s21, 896, %s241_s2, [#allocation10], %s1765_s15, %s1765_s15, %s1766_s12  }
  0x29   : > { %p36_p1 = scmp.ge.s32.totalorder %s35_s5, 4  ;;  %s47_s19 = sadd.s32 1, %s1370_s29 }
  0x2a   : > { %p55_p3 = scmp.eq.s32.totalorder %s1390_s10, 0  ;;  %p60_p7 = scmp.ne.s32.totalorder %s1366_s28, %s1362_s27 }
  0x2b   : > { %s1829_s5 = smov (%p36_p1, %s35_s5), 0  ;;  %s1831_s6 = smov (!%p36_p1, %s38_s6), %s1386_s9 }
  0x2c   : > { %1793 = sst [smem:[#allocation24_spill]] %s1829_s5  ;;  %s1562_s24 = ssub.s32 %s1382_s8, %s1829_s5 }
  0x2d   : > { %p40_p5 = scmp.ge.s32.totalorder %s1831_s6, 2  ;;  %p1569_p8 = por %p55_p3, %p54_p2 }
  0x2e   : > { %p71_p9 = scmp.eq.s32.totalorder %s1562_s24, 0  ;;  %p1578_p12 = por %p61_p0, %p60_p7 }
  0x2f   : > { %s1833_s6 = smov (%p40_p5, %s1831_s6), 0  ;;  %s183_s20 = sadd.s32 1, %s1346_s23 }
  0x30   : > { %1795 = sst [smem:[#allocation25_spill]] %s1833_s6  ;;  %s42_s15 = ssub.s32 %s1386_s9, %s1833_s6 }
  0x31   : > { %p984_p13 = scmp.lt.s32.totalorder %s1390_s10, 8  ;;  %s44_s27 = sor.u32 %s1562_s24, %s42_s15 }
  0x32   : > { %p181_p1 = scmp.eq.s32.totalorder %s42_s15, 0  ;;  %p45_p2 = scmp.eq.s32.totalorder %s44_s27, 0 }
  0x33   : > { %s254_s12 = sand.u32 1, %s1370_s29   ;;  %s805_s14 = sshll.u32 %s1382_s8, 4 }
  0x34   : > { %s1589_s17 = scalar_select %p181_p1, %s1346_s23, %s183_s20  }
  0x35   : > { %s1592_s18 = scalar_select %p45_p2, %s1370_s29, %s47_s19  }
  0x36   : > { %1797 = sst [smem:[#allocation26_spill]] %s1589_s17  ;;  %s804_s5 = sshll.u32 %s254_s12, 6 }
  0x37   : > { %1798 = sst [smem:[#allocation27_spill]] %s1592_s18  ;;  %s806_s6 = sshll.u32 %s1386_s9, 6 }
  0x38   : > { %s258_s7 = scalar_lea.vmem [#allocation3], %s804_s5  ;;  %s263_s15 = sadd.s32 %s806_s6, %s805_s14 }
  0x39   : > { %s268_s4 = sshll.u32 %s258_s7, 4  ;;  %s807_s20 = sshll.u32 %s263_s15, 2  ;;  %s269_s4 = int_to_ptr.vmem [resolvable:$true] %s268_s4 }
  0x3a   : > { %p972_p5 = pnand %p984_p13, %p1569_p8  ;;  %s265_s18 = scalar_lea.hbm %s1755_s0, %s807_s20 }
  0x3b   : > { %s266_s29 = sshll.u32 %s265_s18, 4  ;;  %s255_s17 = scalar_lea.sflag [#allocation4], %s254_s12  ;;  %s267_s29 = int_to_ptr.hbm [resolvable:$true] %s266_s29 }
  0x3c   : > { %s1799_s9 = smov 4   ;;  %s1800_s23 = smov 64  }
  0x3d   : > { %974 = dma.hbm_to_vmem [thread:$0]  (!%p972_p5), %s267_s29, 1024, %s269_s4, %s255_s17, %s1800_s23, %s1800_s23, %s1799_s9  }
  0x3e   : > { %s73_s5 = sadd.s32 1, %s1358_s26  ;;  %p80_p7 = scmp.ne.s32.totalorder %s1358_s26, %s1354_s25 }
  0x3f   : > { %s1612_s6 = scalar_select %p71_p9, %s1358_s26, %s73_s5  }
  0x40   : > { %p82_p1 = por %p80_p7, %p55_p3  ;;  %s278_s7 = sand.u32 1, %s1390_s10  }
  0x41   : > { %s280_s14 = sand.u32 1, %s1358_s26   ;;  %s808_s15 = sshll.u32 %s1382_s8, 3 }
  0x42   : > { %s946_s2 = smul.u32 56, %s280_s14  ;;  %s286_s18 = scalar_lea.hbm %s1756_s1, %s808_s15 }
  0x43   : > { %p975_p8 = pnand %p984_p13, %p82_p1  ;;  %s287_s12 = sshll.u32 %s286_s18, 4  ;;  %s288_s12 = int_to_ptr.hbm [resolvable:$true] %s287_s12 }
  0x44   : > { %s282_s4 = scalar_lea.vmem [#allocation6], %s946_s2  ;;  %s279_s29 = scalar_lea.sflag [#allocation7], %s278_s7 }
  0x45   : > { %s289_s23 = sshll.u32 %s282_s4, 4  ;;  %s1398_s9 = smov 512   ;;  %s290_s23 = int_to_ptr.vmem [resolvable:$true] %s289_s23 }
  0x46   : > { %s1801_s17 = smov 8   ;;  %s1802_s24 = smov 128  }
  0x47   : > { %977 = dma.hbm_to_vmem [thread:$0]  (!%p975_p8), %s288_s12, 896, %s290_s23, %s279_s29, %s1398_s9, %s1802_s24, %s1801_s17  }
  0x48   : > { %301 = sbr.rel (%p1532_p11) target bundleno = 483 (0x1e3), region = 44  ;;  %s303_s27 = sand.u32 (!%p1532_p11), 1, %s1366_s28  }
  0x49   : > { %s810_s5 = sshll.u32 (!%p1532_p11), %s303_s27, 6  ;;  %s304_s14 = scalar_lea.sflag (!%p1532_p11), [#allocation4], %s303_s27 }
  0x4a   : > { %s1629_s15 = scalar_lea.vmem (!%p1532_p11), [#allocation3], %s810_s5 }
  0x4d   : > { %1317 = dma.done.wait (%p1578_p12), %s304_s14, 1024  }
  0x4e   : > { %1319 = vsyncadd (%p1578_p12), %s304_s14, 4294966272  ;;  %s313_s7 = sand.u32 1, %s1506_s11   ;;  %s315_s2 = sand.u32 1, %s1354_s25  }
  0x4f   : > { %s947_s19 = smul.u32 56, %s315_s2  ;;  %s314_s16 = scalar_lea.sflag [#allocation7], %s313_s7 }
  0x51   : > { %s1637_s20 = scalar_lea.vmem [#allocation6], %s947_s19 }
  0x52   : > { %1321 = dma.done.wait (%p1516_p4), %s314_s16, 896  }
  0x53   : > { %1323 = vsyncadd (%p1516_p4), %s314_s16, 4294966400 }
  0x54   : > { %1325 = dma.done.wait (%p61_p0), [#allocation7], 1024  }
  0x55   : > { %1327 = vsyncadd (%p61_p0), [#allocation7], 4294966272 }
  0x56   : > { %1329 = dma.done.wait (%p61_p0), [#allocation10], 896  }
  0x57   : > { %1331 = vsyncadd (%p61_p0), [#allocation10], 4294966400  ;;  %s359_s21 = sand.u32 1, %s1342_s22   ;;  %p813_p4 = scmp.ne.s32.totalorder %s1374_s30, 0 }
  0x58   : > { %s948_s18 = smul.u32 56, %s359_s21 }
  0x59   : > { %366 = sbr.rel (%p813_p4) target bundleno = 102 (0x66), region = 64 }
  0x5a   : > { %s1654_s12 = scalar_lea.vmem [#allocation11], %s948_s18 }
  0x5e   : > { %v1399_v0 = vmov 0.0  }
  0x5f   : > { %367 = vst [vmem:[#allocation2 + $0x30] sm:$0xff] %v1399_v0 }
  0x60   : > { %368 = vst [vmem:[#allocation2] sm:$0xff] %v1399_v0 }
  0x61   : > { %369 = vst [vmem:[#allocation2 + $0x18] sm:$0xff] %v1399_v0 }
  0x62   : > { %370 = vst [vmem:[#allocation2 + $0x10] sm:$0xff] %v1399_v0 }
  0x63   : > { %371 = vst [vmem:[#allocation2 + $0x8] sm:$0xff] %v1399_v0 }
  0x64   : > { %372 = vst [vmem:[#allocation2 + $0x20] sm:$0xff] %v1399_v0 }
  0x65   : > { %373 = vst [vmem:[#allocation2 + $0x28] sm:$0xff] %v1399_v0 }
  0x66 PF: > { %v889_v1 = vld [vmem:[%s1629_s15 + $0x38] sm:$0xff]  ;;  %v888_v2 = vld [vmem:[%s1629_s15 + $0x30] sm:$0xff]  ;;  %v887_v3 = vld [vmem:[%s1629_s15 + $0x28] sm:$0xff]  ;;  %p846_p0 = scmp.ne.s32.totalorder %s1374_s30, 3 }
  0x67   : > { %899 = vmatpush.bf16.msra.mxu2 %v889_v1  ;;  %900 = vmatpush.bf16.msra.mxu3 %v889_v1  ;;  %v886_v4 = vld [vmem:[%s1629_s15 + $0x20] sm:$0xff]  ;;  %v885_v5 = vld [vmem:[%s1629_s15 + $0x18] sm:$0xff]  ;;  %v884_v6 = vld [vmem:[%s1629_s15 + $0x10] sm:$0xff]  ;;  %s1803_s23 = sld [smem:[#allocation29_spill]] (!%p846_p0) }
  0x68   : > { %452 = vmatpush.bf16.msra.mxu0 %v889_v1  ;;  %898 = vmatpush.bf16.msra.mxu1 %v889_v1  ;;  %v883_v7 = vld [vmem:[%s1629_s15 + $0x8] sm:$0xff]  ;;  %v882_v8 = vld [vmem:[%s1629_s15] sm:$0xff]  ;;  %v384_v9 = vld [vmem:[%s1637_s20 + $0x18] sm:$0xff] }
  0x69   : > { %v386_v10 = vld [vmem:[%s1637_s20 + $0x28] sm:$0xff]  ;;  %v381_v11 = vld [vmem:[%s1637_s20] sm:$0xff]  ;;  %v383_v12 = vld [vmem:[%s1637_s20 + $0x10] sm:$0xff] }
  0x6a   : > { %v385_v13 = vld [vmem:[%s1637_s20 + $0x20] sm:$0xff]  ;;  %v387_v14 = vld [vmem:[%s1637_s20 + $0x30] sm:$0xff]  ;;  %v382_v15 = vld [vmem:[%s1637_s20 + $0x8] sm:$0xff] }
  0x6b   : > { %902 = vmatpush.bf16.msra.mxu2 %v888_v2  ;;  %903 = vmatpush.bf16.msra.mxu3 %v888_v2  ;;  %v374_v16 = vld [vmem:[#allocation2 + $0x30] sm:$0xff]  ;;  %v376_v17 = vld [vmem:[#allocation2 + $0x18] sm:$0xff]  ;;  %v379_v23 = vld [vmem:[#allocation2 + $0x20] sm:$0xff] }
  0x6c   : > { %453 = vmatpush.bf16.msra.mxu0 %v888_v2  ;;  %901 = vmatpush.bf16.msra.mxu1 %v888_v2  ;;  %v377_v22 = vld [vmem:[#allocation2 + $0x10] sm:$0xff]  ;;  %v375_v28 = vld [vmem:[#allocation2] sm:$0xff]  ;;  %v378_v31 = vld [vmem:[#allocation2 + $0x8] sm:$0xff] }
  0x6d   : > { %v380_v32 = vld [vmem:[#allocation2 + $0x28] sm:$0xff] }
  0x6f   : > { %905 = vmatpush.bf16.msra.mxu2 %v887_v3  ;;  %906 = vmatpush.bf16.msra.mxu3 %v887_v3 }
  0x70   : > { %454 = vmatpush.bf16.msra.mxu0 %v887_v3  ;;  %904 = vmatpush.bf16.msra.mxu1 %v887_v3 }
  0x73   : > { %908 = vmatpush.bf16.msra.mxu2 %v886_v4  ;;  %909 = vmatpush.bf16.msra.mxu3 %v886_v4 }
  0x74   : > { %455 = vmatpush.bf16.msra.mxu0 %v886_v4  ;;  %907 = vmatpush.bf16.msra.mxu1 %v886_v4 }
  0x77   : > { %911 = vmatpush.bf16.msra.mxu2 %v885_v5  ;;  %912 = vmatpush.bf16.msra.mxu3 %v885_v5 }
  0x78   : > { %456 = vmatpush.bf16.msra.mxu0 %v885_v5  ;;  %910 = vmatpush.bf16.msra.mxu1 %v885_v5 }
  0x7b   : > { %914 = vmatpush.bf16.msra.mxu2 %v884_v6  ;;  %915 = vmatpush.bf16.msra.mxu3 %v884_v6 }
  0x7c   : > { %457 = vmatpush.bf16.msra.mxu0 %v884_v6  ;;  %913 = vmatpush.bf16.msra.mxu1 %v884_v6 }
  0x7f   : > { %917 = vmatpush.bf16.msra.mxu2 %v883_v7  ;;  %918 = vmatpush.bf16.msra.mxu3 %v883_v7 }
  0x80   : > { %458 = vmatpush.bf16.msra.mxu0 %v883_v7  ;;  %916 = vmatpush.bf16.msra.mxu1 %v883_v7 }
  0x83   : > { %920 = vmatpush.bf16.msra.mxu2 %v882_v8  ;;  %921 = vmatpush.bf16.msra.mxu3 %v882_v8 }
  0x84   : > { %459 = vmatpush.bf16.msra.mxu0 %v882_v8  ;;  %919 = vmatpush.bf16.msra.mxu1 %v882_v8 }
  0x86   : > { %469 = vmatmul.f32.vlgmr.msra.gmra.mxu2 %v384_v9  ;;  %475 = vmatmul.f32.vlgmr.msra.gmra.mxu3 %v386_v10 }
  0x87   : > { %460 = vmatmul.f32.vlgmr.msra.gmra.mxu0 %v381_v11  ;;  %466 = vmatmul.f32.vlgmr.msra.gmra.mxu1 %v383_v12 }
  0x8e   : > { %472 = vmatmul.f32.gmra.mxu2 %v385_v13  ;;  %478 = vmatmul.f32.gmra.mxu3 %v387_v14 }
  0x8f   : > { %463 = vmatmul.f32.gmra.mxu0 %v382_v15 }
 0x104   : > { %v461_v18 = vpop.f32.mrf.mxu0  ;;  %v467_v19 = vpop.f32.mrf.mxu1 }
 0x105   : > { %v482_v20 = vadd.f32 %v461_v18, %v374_v16  ;;  %v484_v21 = vadd.f32 %v467_v19, %v376_v17 }
 0x107   : > { %489 = vst [vmem:[#allocation2 + $0x30] sm:$0xff] %v482_v20 }
 0x108   : > { %491 = vst [vmem:[#allocation2 + $0x18] sm:$0xff] %v484_v21 }
 0x109   : > { %v470_v24 = vpop.f32.mrf.mxu2  ;;  %v476_v25 = vpop.f32.mrf.mxu3 }
 0x10a   : > { %v485_v26 = vadd.f32 %v470_v24, %v377_v22  ;;  %v487_v27 = vadd.f32 %v476_v25, %v379_v23 }
 0x10c   : > { %492 = vst [vmem:[#allocation2 + $0x10] sm:$0xff] %v485_v26  ;;  %v464_v29 = vpop.f32.mrf.mxu0 }
 0x10d   : > { %494 = vst [vmem:[#allocation2 + $0x20] sm:$0xff] %v487_v27  ;;  %v483_v30 = vadd.f32 %v464_v29, %v375_v28 }
 0x10f   : > { %490 = vst [vmem:[#allocation2] sm:$0xff] %v483_v30 }
 0x111   : > { %v473_v33 = vpop.f32.mrf.mxu2  ;;  %v479_v34 = vpop.f32.mrf.mxu3  ;;  %499 = sbr.rel (%p846_p0) target bundleno = 460 (0x1cc), region = 68 }
 0x112   : > { %v486_v35 = vadd.f32 %v473_v33, %v378_v31  ;;  %v488_v36 = vadd.f32 %v479_v34, %v380_v32 }
 0x114   : > { %493 = vst [vmem:[#allocation2 + $0x8] sm:$0xff] %v486_v35 }
 0x115   : > { %495 = vst [vmem:[#allocation2 + $0x28] sm:$0xff] %v488_v36 }
 0x116   : > { %v897_v37 = vld [vmem:[#allocation8 + $0x38] sm:$0xff]  ;;  %v896_v38 = vld [vmem:[#allocation8 + $0x30] sm:$0xff]  ;;  %v895_v39 = vld [vmem:[#allocation8 + $0x28] sm:$0xff] }
 0x117   : > { %575 = vmatpush.bf16.msra.mxu0 %v897_v37  ;;  %922 = vmatpush.bf16.msra.mxu1 %v897_v37  ;;  %v894_v40 = vld [vmem:[#allocation8 + $0x20] sm:$0xff]  ;;  %v893_v41 = vld [vmem:[#allocation8 + $0x18] sm:$0xff]  ;;  %v892_v42 = vld [vmem:[#allocation8 + $0x10] sm:$0xff] }
 0x118   : > { %923 = vmatpush.bf16.msra.mxu2 %v897_v37  ;;  %924 = vmatpush.bf16.msra.mxu3 %v897_v37  ;;  %v891_v43 = vld [vmem:[#allocation8 + $0x8] sm:$0xff]  ;;  %v890_v44 = vld [vmem:[#allocation8] sm:$0xff]  ;;  %v501_v46 = vld [vmem:[#allocation2] sm:$0xff] }
 0x119   : > { %v500_v45 = vld [vmem:[#allocation2 + $0x30] sm:$0xff]  ;;  %v502_v47 = vld [vmem:[#allocation2 + $0x18] sm:$0xff]  ;;  %v505_v50 = vld [vmem:[#allocation2 + $0x20] sm:$0xff] }
 0x11a   : > { %v503_v48 = vld [vmem:[#allocation2 + $0x10] sm:$0xff]  ;;  %v507_v52 = vpack.c.bf16 %v501_v46, %v500_v45  ;;  %v1110_v56 = vld [vmem:[%s1758_s3] ss:$0 sm:$0xff]  ;;  %v632_v0 = vld [vmem:[#allocation9] sm:$0xff] }
 0x11b   : > { %576 = vmatpush.bf16.msra.mxu0 %v896_v38  ;;  %925 = vmatpush.bf16.msra.mxu1 %v896_v38  ;;  %v504_v49 = vld [vmem:[#allocation2 + $0x8] sm:$0xff]  ;;  %v508_v53 = vpack.c.bf16 %v503_v48, %v502_v47  ;;  %v1111_v57 = vld [vmem:[%s1803_s23] ss:$0 sm:$0xff]  ;;  %v634_v1 = vld [vmem:[#allocation9 + $0x10] sm:$0xff] }
 0x11c   : > { %926 = vmatpush.bf16.msra.mxu2 %v896_v38  ;;  %927 = vmatpush.bf16.msra.mxu3 %v896_v38  ;;  %v506_v51 = vld [vmem:[#allocation2 + $0x28] sm:$0xff]  ;;  %v509_v54 = vpack.c.bf16 %v505_v50, %v504_v49  ;;  %v638_v17 = vld [vmem:[#allocation9 + $0x30] sm:$0xff]  ;;  %v633_v22 = vld [vmem:[#allocation9 + $0x8] sm:$0xff] }
 0x11d   : > { %v510_v55 = vpack.c.bf16 %v506_v51, %v506_v51  ;;  %v636_v16 = vld [vmem:[#allocation9 + $0x20] sm:$0xff]  ;;  %v635_v23 = vld [vmem:[#allocation9 + $0x18] sm:$0xff]  ;;  %v637_v34 = vld [vmem:[#allocation9 + $0x28] sm:$0xff] }
 0x11f   : > { %577 = vmatpush.bf16.msra.mxu0 %v895_v39  ;;  %928 = vmatpush.bf16.msra.mxu1 %v895_v39 }
 0x120   : > { %929 = vmatpush.bf16.msra.mxu2 %v895_v39  ;;  %930 = vmatpush.bf16.msra.mxu3 %v895_v39 }
 0x123   : > { %578 = vmatpush.bf16.msra.mxu0 %v894_v40  ;;  %931 = vmatpush.bf16.msra.mxu1 %v894_v40 }
 0x124   : > { %932 = vmatpush.bf16.msra.mxu2 %v894_v40  ;;  %933 = vmatpush.bf16.msra.mxu3 %v894_v40 }
 0x127   : > { %579 = vmatpush.bf16.msra.mxu0 %v893_v41  ;;  %934 = vmatpush.bf16.msra.mxu1 %v893_v41 }
 0x128   : > { %935 = vmatpush.bf16.msra.mxu2 %v893_v41  ;;  %936 = vmatpush.bf16.msra.mxu3 %v893_v41 }
 0x12b   : > { %580 = vmatpush.bf16.msra.mxu0 %v892_v42  ;;  %937 = vmatpush.bf16.msra.mxu1 %v892_v42 }
 0x12c   : > { %938 = vmatpush.bf16.msra.mxu2 %v892_v42  ;;  %939 = vmatpush.bf16.msra.mxu3 %v892_v42 }
 0x12f   : > { %581 = vmatpush.bf16.msra.mxu0 %v891_v43  ;;  %940 = vmatpush.bf16.msra.mxu1 %v891_v43 }
 0x130   : > { %941 = vmatpush.bf16.msra.mxu2 %v891_v43  ;;  %942 = vmatpush.bf16.msra.mxu3 %v891_v43 }
 0x133   : > { %582 = vmatpush.bf16.msra.mxu0 %v890_v44  ;;  %943 = vmatpush.bf16.msra.mxu1 %v890_v44 }
 0x134   : > { %944 = vmatpush.bf16.msra.mxu2 %v890_v44  ;;  %945 = vmatpush.bf16.msra.mxu3 %v890_v44 }
 0x136   : > { %583 = vmatmul.bf16.vlgmr.msra.gmra.mxu0 %v507_v52  ;;  %588 = vmatmul.bf16.vlgmr.msra.gmra.mxu1 %v508_v53 }
 0x137   : > { %593 = vmatmul.bf16.vlgmr.msra.gmra.mxu2 %v509_v54  ;;  %598 = vmatmul.bf16.vlgmr.msra.gmra.mxu3 %v510_v55 }
 0x1b3   : > { %v584_v58 = vpop.f32.mrf.mxu0  ;;  %v589_v59 = vpop.f32.mrf.mxu1 }
 0x1b4   : > { %v607_v60 = vmul.f32 %v1110_v56, %v584_v58  ;;  %v609_v61 = vmul.f32 %v1110_v56, %v589_v59 }
 0x1b6   : > { %v618_v62 = vadd.f32 %v1111_v57, %v607_v60  ;;  %v620_v63 = vadd.f32 %v1111_v57, %v609_v61 }
 0x1b8   : > { %v625_v2 = vmax.f32 %v618_v62, 0.0  ;;  %v627_v3 = vmax.f32 %v620_v63, 0.0 }
 0x1ba   : > { %v639_v4 = vmul.f32 %v632_v0, %v625_v2  ;;  %v641_v5 = vmul.f32 %v634_v1, %v627_v3  ;;  %v594_v6 = vpop.f32.mrf.mxu2  ;;  %v599_v7 = vpop.f32.mrf.mxu3 }
 0x1bb   : > { %v611_v8 = vmul.f32 %v1110_v56, %v594_v6  ;;  %v613_v9 = vmul.f32 %v1110_v56, %v599_v7  ;;  %v586_v10 = vpop.f32.mrf.mxu0  ;;  %v591_v11 = vpop.f32.mrf.mxu1 }
 0x1bc   : > { %646 = vst [vmem:[%s1654_s12] sm:$0xff] %v639_v4  ;;  %v608_v12 = vmul.f32 %v1110_v56, %v586_v10  ;;  %v610_v13 = vmul.f32 %v1110_v56, %v591_v11 }
 0x1bd   : > { %648 = vst [vmem:[%s1654_s12 + $0x10] sm:$0xff] %v641_v5  ;;  %v622_v14 = vadd.f32 %v1111_v57, %v611_v8  ;;  %v624_v15 = vadd.f32 %v1111_v57, %v613_v9 }
 0x1be   : > { %v619_v18 = vadd.f32 %v1111_v57, %v608_v12  ;;  %v621_v19 = vadd.f32 %v1111_v57, %v610_v13 }
 0x1bf   : > { %v629_v20 = vmax.f32 %v622_v14, 0.0  ;;  %v631_v21 = vmax.f32 %v624_v15, 0.0 }
 0x1c0   : > { %v626_v24 = vmax.f32 %v619_v18, 0.0  ;;  %v628_v25 = vmax.f32 %v621_v19, 0.0 }
 0x1c1   : > { %v643_v26 = vmul.f32 %v636_v16, %v629_v20  ;;  %v645_v27 = vmul.f32 %v638_v17, %v631_v21 }
 0x1c2   : > { %v640_v28 = vmul.f32 %v633_v22, %v626_v24  ;;  %v642_v29 = vmul.f32 %v635_v23, %v628_v25  ;;  %v596_v30 = vpop.f32.mrf.mxu2  ;;  %v601_v31 = vpop.f32.mrf.mxu3 }
 0x1c3   : > { %650 = vst [vmem:[%s1654_s12 + $0x20] sm:$0xff] %v643_v26  ;;  %v612_v32 = vmul.f32 %v1110_v56, %v596_v30 }
 0x1c4   : > { %652 = vst [vmem:[%s1654_s12 + $0x30] sm:$0xff] %v645_v27 }
 0x1c5   : > { %647 = vst [vmem:[%s1654_s12 + $0x8] sm:$0xff] %v640_v28  ;;  %v623_v33 = vadd.f32 %v1111_v57, %v612_v32 }
 0x1c6   : > { %649 = vst [vmem:[%s1654_s12 + $0x18] sm:$0xff] %v642_v29 }
 0x1c7   : > { %v630_v35 = vmax.f32 %v623_v33, 0.0 }
 0x1c9   : > { %v644_v36 = vmul.f32 %v637_v34, %v630_v35 }
 0x1cb   : > { %651 = vst [vmem:[%s1654_s12 + $0x28] sm:$0xff] %v644_v36 }
 0x1cc PF: > { %s1804_s29 = sld [smem:[#allocation20_spill]]  ;;  %s666_s24 = sshll.u32 %s1654_s12, 4  ;;  %s667_s24 = int_to_ptr.vmem [resolvable:$true] %s666_s24 }
 0x1cd   : > { %s1806_s14 = sld [smem:[#allocation31_spill]]  ;;  %s654_s2 = scalar_lea.sflag [#allocation5], %s359_s21 }
 0x1d2   : > { %s949_s17 = smul.u32 56, %s1804_s29 }
 0x1d3   : > { %s1252_s12 = scalar_lea.hbm %s1806_s14, 112 }
 0x1d4   : > { %s665_s15 = scalar_lea.hbm %s1806_s14, %s949_s17 }
 0x1d5   : > { %s668_s7 = sshll.u32 %s665_s15, 4  ;;  %s669_s7 = int_to_ptr.hbm [resolvable:$true] %s668_s7 }
 0x1d6   : > { %s1246_s19 = sshra.s32 %s669_s7, 4  ;;  %s1247_s19 = int_to_ptr.hbm [resolvable:$true] %s1246_s19 }
 0x1d7   : > { %s1248_s16 = scalar_lea.hbm %s1247_s19, 56  ;;  %p1253_p12 = scmp.lt.s32.totalorder %s1247_s19, %s1806_s14 }
 0x1d8   : > { %p1249_p11 = scmp.ne.s32.totalorder %s1247_s19, %s1248_s16  ;;  %p1254_p13 = scmp.lt.s32.totalorder %s1252_s12, %s1248_s16 }
 0x1da   : > { %p1250_p3 = pnand %p1249_p11, %p1522_p6  ;;  %p1255_p2 = por %p1254_p13, %p1253_p12 }
 0x1dc   : > { %p1251_p9 = pneg %p1250_p3 }
 0x1de   : > { %p1256_p5 = pnand %p1255_p2, %p1251_p9 }
 0x1e0   : > { %1259 = shalt.err (!%p1256_p5)
}
 0x1e1   : > { %s1400_s21 = smov 128   ;;  %s1401_s13 = smov 8  }
 0x1e2   : > { %962 = dma.vmem_to_hbm [thread:$0]  (%p1522_p6), %s667_s24, 896, %s669_s7, %s654_s2, %s1400_s21, %s1400_s21, %s1401_s13  }
 0x1e3 PF: > { %s1807_s4 = sld [smem:[#allocation17_spill]]  ;;  %p987_p7 = scmp.ge.s32.totalorder %s1390_s10, 2 }
 0x1e5   : > { %p979_p1 = pnand %p987_p7, %p1528_p10 }
 0x1e7   : > { %p980_p8 = pneg %p979_p1 }
 0x1e9   : > { %s683_s29 = sand.u32 1, %s1807_s4  }
 0x1ea   : > { %s684_s17 = scalar_lea.sflag [#allocation5], %s683_s29 }
 0x1eb   : > { %1333 = dma.done.wait (%p980_p8), %s684_s17, 896  }
 0x1ec   : > { %1335 = vsyncadd (%p980_p8), %s684_s17, 4294966400  ;;  %s26_s10 = sadd.s32 1, %s1390_s10   ;;  %s1810_s9 = sld [smem:[#allocation18_spill]] }
 0x1ed   : > { %p1708_p4 = scmp.ge.s32.totalorder %s26_s10, 10   ;;  %s1811_s23 = sld [smem:[#allocation26_spill]] }
 0x1ee   : > { %s1812_s5 = sld [smem:[#allocation19_spill]]  ;;  %s1818_s21 = smov %s1342_s22 }
 0x1ef   : > { %s1813_s29 = sld [smem:[#allocation27_spill]]  ;;  %s1820_s24 = smov %s1354_s25 }
 0x1f0   : > { %s1814_s7 = sld [smem:[#allocation21_spill]]  ;;  %s1821_s25 = smov %s1358_s26 }
 0x1f1   : > { %s1815_s15 = sld [smem:[#allocation24_spill]]  ;;  %s1822_s26 = smov %s1612_s6 }
 0x1f2   : > { %s1816_s2 = sld [smem:[#allocation25_spill]]  ;;  %s1819_s22 = smov %s1810_s9 }
 0x1f3   : > { %s1823_s27 = smov %s1366_s28  ;;  %s1825_s30 = smov %s1382_s8 }
 0x1f4   : > { %s1824_s28 = smov %s1812_s5  ;;  %25 = sbr.rel (!%p1708_p4) target bundleno = 18 (0x12), region = 118 }
 0x1f7   : > { %s1826_s8 = smov %s1815_s15 }
 0x1f8   : > { %s1827_s9 = smov %s1816_s2 }
 0x1f9   :  { %690 = vsyncpa [#allocation4], 1 }
 0x1fa   :  { %692 = vsyncpa [#allocation4 + $0x1], 1 }
 0x1fb   :  { %693 = vsyncpa [#allocation7], 1 }
 0x1fc   :  { %695 = vsyncpa [#allocation7 + $0x1], 1 }
 0x1fd   :  { %696 = vsyncpa [#allocation10], 1 }
 0x1fe   :  { %697 = vsyncpa [#allocation5], 1 }
 0x1ff   :  { %699 = vsyncpa [#allocation5 + $0x1], 1 }

</bundles_post_ra>
